<compile_context>
chip_gen: v5e
topology: v5e:2x2
jax: 0.10.0
libtpu: 0.0.40
codegen_flags: <defaults>
</compile_context>

<pallas_src>
import jax
import jax.numpy as jnp
from jax.experimental import pallas as pl
from jax.experimental.pallas import tpu as pltpu

IN_FEATURES = 2
OUT_FEATURES = 1
LANE = 128


def linear_kernel(w_ref, b_ref, xt_ref, o_ref):
    # w_ref: SMEM (2,)   b_ref: SMEM (1,)
    # xt_ref: VMEM (2, BLK)   o_ref: VMEM (1, BLK)
    w0 = w_ref[0]
    w1 = w_ref[1]
    b0 = b_ref[0]
    # 2 vmul + 2 vadd on the VPU; scalars broadcast from SMEM.
    o_ref[...] = xt_ref[0:1, :] * w0 + xt_ref[1:2, :] * w1 + b0


def linear_forward(x, weight, bias):
    """Forward of nn.Linear(2, 1).

    x:      (B, 2)  float32
    weight: (1, 2)  float32  (PyTorch (out, in) layout)
    bias:   (1,)    float32
    returns (B, 1)  float32
    """
    B, in_f = x.shape
    assert in_f == IN_FEATURES and weight.shape == (OUT_FEATURES, IN_FEATURES)

    # Lane-dense layout: batch on the last (lane) axis.
    x_t = x.T  # (IN_FEATURES, B)

    # Lane-aligned block over batch; pad batch to a multiple of the block.
    if B >= 4 * LANE:
        blk = 4 * LANE  # 512-lane blocks amortize per-step overhead
    else:
        blk = LANE * pl.cdiv(B, LANE)  # single padded block for small B
    b_pad = blk * pl.cdiv(B, blk)
    if b_pad != B:
        x_t = jnp.pad(x_t, ((0, 0), (0, b_pad - B)))

    w_flat = weight.reshape(IN_FEATURES)  # (2,) scalars for SMEM

    y_t = pl.pallas_call(
        linear_kernel,
        out_shape=jax.ShapeDtypeStruct((OUT_FEATURES, b_pad), jnp.float32),
        grid=(b_pad // blk,),
        in_specs=[
            pl.BlockSpec(memory_space=pltpu.MemorySpace.SMEM),  # weight scalars
            pl.BlockSpec(memory_space=pltpu.MemorySpace.SMEM),  # bias scalar
            pl.BlockSpec((IN_FEATURES, blk), lambda i: (0, i)),  # x^T lane tiles
        ],
        out_specs=pl.BlockSpec((OUT_FEATURES, blk), lambda i: (0, i)),
        compiler_params=pltpu.CompilerParams(
            dimension_semantics=("parallel",),  # shard batch blocks across TCs on v7x
        ),
    )(w_flat, bias, x_t)

    # Slice off lane padding and return (B, out_features).
    return y_t[:, :B].T


if __name__ == "__main__":
    key = jax.random.PRNGKey(0)
    k_x, k_w, k_b = jax.random.split(key, 3)

    B = 8

    # Deterministic parameter init mimicking nn.Linear default:
    # uniform(-1/sqrt(in_features), 1/sqrt(in_features)); stored (out, in).
    bound = 1.0 / jnp.sqrt(jnp.float32(IN_FEATURES))
    weight = jax.random.uniform(
        k_w, (OUT_FEATURES, IN_FEATURES), jnp.float32, -bound, bound
    )
    bias = jax.random.uniform(k_b, (OUT_FEATURES,), jnp.float32, -bound, bound)

    x = jax.random.normal(k_x, (B, IN_FEATURES), jnp.float32)

    y = linear_forward(x, weight, bias)
    y = jax.block_until_ready(y)

    # Reference check against plain JAX (same semantics as nn.Linear forward).
    y_ref = x @ weight.T + bias
    assert y.shape == (B, OUT_FEATURES)
    assert jnp.allclose(y, y_ref, atol=1e-5, rtol=1e-5)

    print("KERNEL_OK")
</pallas_src>

<mosaic_0001>
module attributes {stable_mosaic.version = 11 : i64} {
  func.func @linear_kernel(%arg0: i32, %arg1: memref<2xf32, #tpu.memory_space<smem>>, %arg2: memref<1xf32, #tpu.memory_space<smem>>, %arg3: memref<2x128xf32, #tpu.memory_space<vmem>>, %arg4: memref<1x128xf32, #tpu.memory_space<vmem>>) attributes {dimension_semantics = [#tpu.dimension_semantics<parallel>], iteration_bounds = array<i64: 1>, scalar_prefetch = 0 : i64, scratch_operands = 0 : i64, tpu.core_type = #tpu.core_type<tc>, window_params = [{transform_indices = @transform_0, window_bounds = array<i64: 2>}, {transform_indices = @transform_1, window_bounds = array<i64: 1>}, {transform_indices = @transform_2, window_bounds = array<i64: 2, 128>}, {transform_indices = @transform_3, window_bounds = array<i64: 1, 128>}]} {
    %c0 = arith.constant 0 : index
    %0 = memref.load %arg1[%c0] : memref<2xf32, #tpu.memory_space<smem>>
    %c1 = arith.constant 1 : index
    %1 = memref.load %arg1[%c1] : memref<2xf32, #tpu.memory_space<smem>>
    %c0_0 = arith.constant 0 : index
    %2 = memref.load %arg2[%c0_0] : memref<1xf32, #tpu.memory_space<smem>>
    %c0_1 = arith.constant 0 : index
    %c0_2 = arith.constant 0 : index
    %3 = vector.load %arg3[%c0_1, %c0_2] : memref<2x128xf32, #tpu.memory_space<vmem>>, vector<1x128xf32>
    %4 = vector.broadcast %0 : f32 to vector<1x128xf32>
    %5 = arith.mulf %3, %4 : vector<1x128xf32>
    %c1_3 = arith.constant 1 : index
    %c0_4 = arith.constant 0 : index
    %6 = vector.load %arg3[%c1_3, %c0_4] : memref<2x128xf32, #tpu.memory_space<vmem>>, vector<1x128xf32>
    %7 = vector.broadcast %1 : f32 to vector<1x128xf32>
    %8 = arith.mulf %6, %7 : vector<1x128xf32>
    %9 = arith.addf %5, %8 : vector<1x128xf32>
    %10 = vector.broadcast %2 : f32 to vector<1x128xf32>
    %11 = arith.addf %9, %10 : vector<1x128xf32>
    %c0_5 = arith.constant 0 : index
    %c0_6 = arith.constant 0 : index
    %12 = vector.load %arg4[%c0_5, %c0_6] : memref<1x128xf32, #tpu.memory_space<vmem>>, vector<1x128xf32>
    tpu.vector_store %arg4[%c0_5, %c0_6], %11 {strides = array<i32>} : memref<1x128xf32, #tpu.memory_space<vmem>>, vector<1x128xf32>,
    return
  }
  func.func @transform_0(%arg0: i32) -> i32 {
    %c0_i32 = arith.constant 0 : i32
    %c0_i32_0 = arith.constant 0 : i32
    return %c0_i32 : i32
  }
  func.func @transform_1(%arg0: i32) -> i32 {
    %c0_i32 = arith.constant 0 : i32
    %c0_i32_0 = arith.constant 0 : i32
    return %c0_i32 : i32
  }
  func.func @transform_2(%arg0: i32) -> (i32, i32) {
    %c0_i32 = arith.constant 0 : i32
    %c0_i32_0 = arith.constant 0 : i32
    return %c0_i32, %arg0 : i32, i32
  }
  func.func @transform_3(%arg0: i32) -> (i32, i32) {
    %c0_i32 = arith.constant 0 : i32
    %c0_i32_0 = arith.constant 0 : i32
    return %c0_i32, %arg0 : i32, i32
  }
}

</mosaic_0001>

<bundles_post_ra>
// kernel: tpu_custom_call.1
= control target key start
LH: loop header
LB: loop body
LE: loop exit
PB: predicated region body
PF: predicated region fallthrough
CT: control target
= control target key end

     0   :  { %9 = vsyncpa [#allocation5], 0  ;;  %s139_s0 = inlined_call_operand.hbm [shape: f32[2], index: 0, kind: input, shape index: {}]   ;;  %s140_s1 = inlined_call_operand.<no memory space> [shape: f32[1], index: 1, kind: input, shape index: {}]   ;;  %s141_s2 = inlined_call_operand.vmem [shape: f32[2,128], index: 2, kind: input, shape index: {}]   ;;  %s142_s3 = inlined_call_operand.hbm [shape: f32[1,128], index: 3, kind: output, shape index: {}]  }
   0x1   :  { %10 = vsyncpa [#allocation4], 0  ;;  %s16_s14 = sshll.u32 %s139_s0, 4  ;;  %s102_s15 = smov [#allocation3]   ;;  %s17_s14 = int_to_ptr.hbm [resolvable:$true] %s16_s14 }
   0x2   :  { %19 = dma.hbm_to_smem %s17_s14, 16, %s102_s15, [#allocation5]  }
   0x3   :  { %98 = dma.done.wait [#allocation5], 16  }
   0x4   :  { %99 = vsyncadd [#allocation5], 4294967280 }
   0x5   :  { %28 = sfence }
   0x6   :  { %s29_s16 = sld [smem:[#allocation3]]  ;;  %v32_v0 = vld [vmem:[%s141_s2] sm:$0x1]  ;;  %v35_v1 = vld [vmem:[%s141_s2 + $0x1] sm:$0x1]  ;;  %v39_v6 = vstv %s140_s1  ;;  %s103_s23 = smov [#allocation6]  }
   0x7   :  { %s59_s17 = sld [smem:[#allocation3 + $0x1]]  ;;  %s47_s24 = sshll.u32 %s103_s23, 4  ;;  %s48_s24 = int_to_ptr.vmem [resolvable:$true] %s47_s24 }
   0x8   :  { %s49_s27 = sshll.u32 %s142_s3, 4  ;;  %s50_s27 = int_to_ptr.hbm [resolvable:$true] %s49_s27 }
   0xc   :  { %v33_v2 = vstv %s29_s16 }
   0xd   :  { %v34_v3 = vmul.f32 %v33_v2, %v32_v0  ;;  %v36_v4 = vstv %s59_s17 }
   0xe   :  { %v37_v5 = vmul.f32 %v36_v4, %v35_v1 }
  0x10   :  { %v38_v7 = vadd.f32 %v37_v5, %v34_v3 }
  0x12   :  { %v40_v8 = vadd.f32 %v39_v6, %v38_v7 }
  0x14   :  { %41 = vst [vmem:[#allocation6] sm:$0x1] %v40_v8 }
  0x15   :  { %52 = dma.vmem_to_hbm [thread:$0]  %s48_s24, 16, %s50_s27, [#allocation4]  }
  0x16   :  { %100 = dma.done.wait [#allocation4], 16  }
  0x17   :  { %101 = vsyncadd [#allocation4], 4294967280 }
  0x18   :  { %57 = vsyncpa [#allocation4], 1 }
  0x19   :  { %58 = vsyncpa [#allocation5], 1 }

</bundles_post_ra>
